<compile_context>
chip_gen: v7x
topology: tpu7x:2x2x1
jax: 0.10.0
libtpu: 0.0.40
codegen_flags: <defaults>
</compile_context>

<pallas_src>
import jax
import jax.numpy as jnp
from jax.experimental import pallas as pl
from jax.experimental.pallas import tpu as pltpu


# --------------------------------------------------------------------------
# Stage 1: per-hyperedge features (reduction over N row tiles)
#   S_loc = R_loc @ (x @ W_loc + b_loc)   [E, F]
#   S_act = R_act @ (x @ W_act + b_act)   [E, F]
# --------------------------------------------------------------------------
def stage1_kernel(x_ref, rl_ref, ra_ref, wcat_ref, bcat_ref,
                  sloc_ref, sact_ref, accl_ref, acca_ref):
    i = pl.program_id(0)

    @pl.when(i == 0)
    def _():
        accl_ref[...] = jnp.zeros_like(accl_ref)
        acca_ref[...] = jnp.zeros_like(acca_ref)

    F = sloc_ref.shape[1]
    # One fused projection for both branches: x_tile @ [W_loc | W_act] + b_cat.
    # Adding the broadcast bias per row-tile is exact:
    #   sum_tiles R[:, tile] @ (xW + b) == R @ (xW + b).
    xw = jnp.dot(x_ref[...], wcat_ref[...],
                 preferred_element_type=jnp.float32) + bcat_ref[...]
    accl_ref[...] += jnp.dot(rl_ref[...], xw[:, :F],
                             preferred_element_type=jnp.float32)
    acca_ref[...] += jnp.dot(ra_ref[...], xw[:, F:],
                             preferred_element_type=jnp.float32)

    @pl.when(i == pl.num_programs(0) - 1)
    def _():
        sloc_ref[...] = accl_ref[...]
        sact_ref[...] = acca_ref[...]


# --------------------------------------------------------------------------
# Stage 2: per-node aggregation + folded fc head (row-tiled, parallel).
#   out_tile = LeakyReLU(L_loc_tile @ S_loc) + LeakyReLU(L_act_tile @ S_act)
#   out_tile = out_tile @ W_fc + b_fc            (the /2 is folded into W_fc)
# --------------------------------------------------------------------------
def stage2_kernel(ll_ref, la_ref, sloc_ref, sact_ref, wfc_ref, bfc_ref, out_ref):
    loc2 = jnp.dot(ll_ref[...], sloc_ref[...], preferred_element_type=jnp.float32)
    act2 = jnp.dot(la_ref[...], sact_ref[...], preferred_element_type=jnp.float32)
    # nn.LeakyReLU default negative_slope = 0.01
    loc2 = jnp.where(loc2 >= 0, loc2, 0.01 * loc2)
    act2 = jnp.where(act2 >= 0, act2, 0.01 * act2)
    two = loc2 + act2
    out_ref[...] = (jnp.dot(two, wfc_ref[...], preferred_element_type=jnp.float32)
                    + bfc_ref[...]).astype(out_ref.dtype)


def hgnn_conv(x, left_location, right_location, left_activity, right_activity,
              w_loc, b_loc, w_act, b_act, fc1_w, fc1_b, fc2_w, fc2_b, *, tm=128):
    x = x.astype(jnp.float32)
    N, in_ft = x.shape
    E = left_location.shape[1]
    F = w_loc.shape[1]
    out_ft2 = fc2_w.shape[1]

    # --- wrapper-side parameter fusion (tiny, param-sized XLA ops) ---
    w_cat = jnp.concatenate([w_loc, w_act], axis=1).astype(jnp.float32)   # [in_ft, 2F]
    b_cat = jnp.concatenate([b_loc.reshape(1, F), b_act.reshape(1, F)],
                            axis=1).astype(jnp.float32)                   # [1, 2F]
    # No nonlinearity between fc1 and fc2 in the original nn.Sequential -> fold,
    # and fold the /2 of the branch mean into the weight as well.
    w_fc = 0.5 * (fc1_w @ fc2_w)                                          # [F, out_ft2]
    b_fc = fc1_b.reshape(1, -1) @ fc2_w + fc2_b.reshape(1, -1)            # [1, out_ft2]

    # Lane-dense output: pad folded fc columns to a multiple of 128.
    pad_cols = ((out_ft2 + 127) // 128) * 128
    w_fc_pad = jnp.zeros((F, pad_cols), jnp.float32).at[:, :out_ft2].set(w_fc)
    b_fc_pad = jnp.zeros((1, pad_cols), jnp.float32).at[:, :out_ft2].set(b_fc)

    # --- pad the node dimension to a multiple of the row tile ---
    tm = min(tm, N)
    n_pad = (-N) % tm
    if n_pad:
        # Padded x rows only ever meet padded (zero) R columns in stage 1, so the
        # accumulators are exact; padded stage-2 output rows are sliced off below.
        x_p = jnp.pad(x, ((0, n_pad), (0, 0)))
        rl_p = jnp.pad(right_location, ((0, 0), (0, n_pad)))
        ra_p = jnp.pad(right_activity, ((0, 0), (0, n_pad)))
        ll_p = jnp.pad(left_location, ((0, n_pad), (0, 0)))
        la_p = jnp.pad(left_activity, ((0, n_pad), (0, 0)))
    else:
        x_p, rl_p, ra_p = x, right_location, right_activity
        ll_p, la_p = left_location, left_activity
    Np = N + n_pad
    grid_n = Np // tm

    # ---------------- stage 1: S_loc, S_act  (reduction over N) ----------------
    s_loc, s_act = pl.pallas_call(
        stage1_kernel,
        out_shape=(jax.ShapeDtypeStruct((E, F), jnp.float32),
                   jax.ShapeDtypeStruct((E, F), jnp.float32)),
        grid_spec=pltpu.PrefetchScalarGridSpec(
            num_scalar_prefetch=0,
            grid=(grid_n,),
            in_specs=[
                pl.BlockSpec((tm, in_ft), lambda i: (i, 0)),     # x row tile
                pl.BlockSpec((E, tm), lambda i: (0, i)),         # R_loc col tile
                pl.BlockSpec((E, tm), lambda i: (0, i)),         # R_act col tile
                pl.BlockSpec((in_ft, 2 * F), lambda i: (0, 0)),  # fused W (resident)
                pl.BlockSpec((1, 2 * F), lambda i: (0, 0)),      # fused b (resident)
            ],
            out_specs=[
                pl.BlockSpec((E, F), lambda i: (0, 0)),
                pl.BlockSpec((E, F), lambda i: (0, 0)),
            ],
            scratch_shapes=[pltpu.VMEM((E, F), jnp.float32),
                            pltpu.VMEM((E, F), jnp.float32)],
        ),
        compiler_params=pltpu.CompilerParams(
            dimension_semantics=("arbitrary",)),
    )(x_p, rl_p, ra_p, w_cat, b_cat)

    # ---------------- stage 2: node aggregation + fc head (parallel) -----------
    out_padded = pl.pallas_call(
        stage2_kernel,
        out_shape=jax.ShapeDtypeStruct((Np, pad_cols), jnp.float32),
        grid_spec=pltpu.PrefetchScalarGridSpec(
            num_scalar_prefetch=0,
            grid=(grid_n,),
            in_specs=[
                pl.BlockSpec((tm, E), lambda i: (i, 0)),          # L_loc row tile
                pl.BlockSpec((tm, E), lambda i: (i, 0)),          # L_act row tile
                pl.BlockSpec((E, F), lambda i: (0, 0)),           # S_loc (resident)
                pl.BlockSpec((E, F), lambda i: (0, 0)),           # S_act (resident)
                pl.BlockSpec((F, pad_cols), lambda i: (0, 0)),    # folded fc W
                pl.BlockSpec((1, pad_cols), lambda i: (0, 0)),    # folded fc b
            ],
            out_specs=pl.BlockSpec((tm, pad_cols), lambda i: (i, 0)),
        ),
        compiler_params=pltpu.CompilerParams(
            dimension_semantics=("parallel",)),   # megacore on v7x
    )(ll_p, la_p, s_loc, s_act, w_fc_pad, b_fc_pad)

    # TODO(synk): for very large E*F, S_loc/S_act no longer fit resident in VMEM
    # and stage 2 would need a K-tiled (E) reduction axis; kept resident here.
    return out_padded[:N, :out_ft2]


def hgnn_conv_ref(x, ll, rl, la, ra, w_loc, b_loc, w_act, b_act,
                  fc1_w, fc1_b, fc2_w, fc2_b):
    def lrelu(v):
        return jnp.where(v >= 0, v, 0.01 * v)
    loc2 = lrelu((ll @ rl) @ (x @ w_loc + b_loc))
    act2 = lrelu((la @ ra) @ (x @ w_act + b_act))
    two = (loc2 + act2) * 0.5
    return (two @ fc1_w + fc1_b) @ fc2_w + fc2_b


if __name__ == "__main__":
    # Small shapes consistent with the module's forward (N nodes, E hyperedges).
    N, E = 256, 96
    in_ft, out_ft, out_ft2 = 64, 64, 16

    key = jax.random.PRNGKey(0)
    keys = jax.random.split(key, 12)

    x = jax.random.normal(keys[0], (N, in_ft), jnp.float32)
    # scale the incidence-like matrices so intermediates stay O(1)
    left_location = 0.1 * jax.random.normal(keys[1], (N, E), jnp.float32)
    right_location = 0.1 * jax.random.normal(keys[2], (E, N), jnp.float32)
    left_activity = 0.1 * jax.random.normal(keys[3], (N, E), jnp.float32)
    right_activity = 0.1 * jax.random.normal(keys[4], (E, N), jnp.float32)

    # Parameters matching __init__: xavier-normal weights, zero biases,
    # small random init for the fc Sequential (Linear(out_ft,out_ft), Linear(out_ft,out_ft2)).
    xav_std = (2.0 / (in_ft + out_ft)) ** 0.5
    w_loc = xav_std * jax.random.normal(keys[5], (in_ft, out_ft), jnp.float32)
    w_act = xav_std * jax.random.normal(keys[6], (in_ft, out_ft), jnp.float32)
    b_loc = jnp.zeros((out_ft,), jnp.float32)
    b_act = jnp.zeros((out_ft,), jnp.float32)

    fc1_w = 0.1 * jax.random.normal(keys[7], (out_ft, out_ft), jnp.float32)
    fc1_b = 0.1 * jax.random.normal(keys[8], (out_ft,), jnp.float32)
    fc2_w = 0.1 * jax.random.normal(keys[9], (out_ft, out_ft2), jnp.float32)
    fc2_b = 0.1 * jax.random.normal(keys[10], (out_ft2,), jnp.float32)

    args = (x, left_location, right_location, left_activity, right_activity,
            w_loc, b_loc, w_act, b_act, fc1_w, fc1_b, fc2_w, fc2_b)

    out = hgnn_conv(*args)
    jax.block_until_ready(out)

    ref = hgnn_conv_ref(*args)
    assert out.shape == (N, out_ft2)
    # Re-association ((L@R)@h -> L@(R@h)) and fc folding change float rounding
    # slightly, hence the looser tolerance (values are O(1) here).
    assert jnp.allclose(out, ref, atol=2e-2, rtol=2e-2), "mismatch vs pure-JAX reference"

    print("KERNEL_OK")
</pallas_src>

<mosaic_0001>
module attributes {stable_mosaic.version = 11 : i64} {
  func.func @stage1_kernel(%arg0: i32, %arg1: memref<128x64xf32, #tpu.memory_space<vmem>>, %arg2: memref<96x128xf32, #tpu.memory_space<vmem>>, %arg3: memref<96x128xf32, #tpu.memory_space<vmem>>, %arg4: memref<64x128xf32, #tpu.memory_space<vmem>>, %arg5: memref<1x128xf32, #tpu.memory_space<vmem>>, %arg6: memref<96x64xf32, #tpu.memory_space<vmem>>, %arg7: memref<96x64xf32, #tpu.memory_space<vmem>>, %arg8: memref<96x64xf32, #tpu.memory_space<vmem>>, %arg9: memref<96x64xf32, #tpu.memory_space<vmem>>) attributes {dimension_semantics = [#tpu.dimension_semantics<arbitrary>], iteration_bounds = array<i64: 2>, scalar_prefetch = 0 : i64, scratch_operands = 2 : i64, tpu.core_type = #tpu.core_type<tc>, window_params = [{transform_indices = @transform_0, window_bounds = array<i64: 128, 64>}, {transform_indices = @transform_1, window_bounds = array<i64: 96, 128>}, {transform_indices = @transform_2, window_bounds = array<i64: 96, 128>}, {pipeline_mode = #tpu.pipeline_mode<synchronous>, transform_indices = @transform_3, window_bounds = array<i64: 64, 128>}, {pipeline_mode = #tpu.pipeline_mode<synchronous>, transform_indices = @transform_4, window_bounds = array<i64: 1, 128>}, {pipeline_mode = #tpu.pipeline_mode<synchronous>, transform_indices = @transform_5, window_bounds = array<i64: 96, 64>}, {pipeline_mode = #tpu.pipeline_mode<synchronous>, transform_indices = @transform_6, window_bounds = array<i64: 96, 64>}]} {
    %c0_i32 = arith.constant 0 : i32
    %0 = arith.cmpi eq, %arg0, %c0_i32 : i32
    %1 = arith.extui %0 : i1 to i32
    %c0_i32_0 = arith.constant 0 : i32
    %2 = arith.cmpi ne, %1, %c0_i32_0 : i32
    scf.if %2 {
      %cst_21 = arith.constant 0.000000e+00 : f32
      %24 = vector.broadcast %cst_21 : f32 to vector<96x64xf32>
      %c0_22 = arith.constant 0 : index
      %c0_23 = arith.constant 0 : index
      %25 = vector.load %arg8[%c0_22, %c0_23] : memref<96x64xf32, #tpu.memory_space<vmem>>, vector<96x64xf32>
      tpu.vector_store %arg8[%c0_22, %c0_23], %24 {strides = array<i32>} : memref<96x64xf32, #tpu.memory_space<vmem>>, vector<96x64xf32>,
      %cst_24 = arith.constant 0.000000e+00 : f32
      %26 = vector.broadcast %cst_24 : f32 to vector<96x64xf32>
      %c0_25 = arith.constant 0 : index
      %c0_26 = arith.constant 0 : index
      %27 = vector.load %arg9[%c0_25, %c0_26] : memref<96x64xf32, #tpu.memory_space<vmem>>, vector<96x64xf32>
      tpu.vector_store %arg9[%c0_25, %c0_26], %26 {strides = array<i32>} : memref<96x64xf32, #tpu.memory_space<vmem>>, vector<96x64xf32>,
    } else {
    }
    %c0 = arith.constant 0 : index
    %c0_1 = arith.constant 0 : index
    %3 = vector.load %arg1[%c0, %c0_1] : memref<128x64xf32, #tpu.memory_space<vmem>>, vector<128x64xf32>
    %c0_2 = arith.constant 0 : index
    %c0_3 = arith.constant 0 : index
    %4 = vector.load %arg4[%c0_2, %c0_3] : memref<64x128xf32, #tpu.memory_space<vmem>>, vector<64x128xf32>
    %cst = arith.constant dense<0.000000e+00> : vector<128x128xf32>
    %5 = tpu.matmul %3, %4, %cst {dimension_numbers = #tpu.dot_dimension_numbers<[1], [0], [0], [1], [0, 0, 1, 1], [], []>} : vector<128x64xf32>, vector<64x128xf32>, vector<128x128xf32> -> vector<128x128xf32>
    %c0_4 = arith.constant 0 : index
    %c0_5 = arith.constant 0 : index
    %6 = vector.load %arg5[%c0_4, %c0_5] : memref<1x128xf32, #tpu.memory_space<vmem>>, vector<1x128xf32>
    %7 = vector.broadcast %6 : vector<1x128xf32> to vector<128x128xf32>
    %8 = arith.addf %5, %7 : vector<128x128xf32>
    %c0_6 = arith.constant 0 : index
    %c0_7 = arith.constant 0 : index
    %9 = vector.load %arg8[%c0_6, %c0_7] : memref<96x64xf32, #tpu.memory_space<vmem>>, vector<96x64xf32>
    %c0_8 = arith.constant 0 : index
    %c0_9 = arith.constant 0 : index
    %10 = vector.load %arg2[%c0_8, %c0_9] : memref<96x128xf32, #tpu.memory_space<vmem>>, vector<96x128xf32>
    %11 = vector.extract_strided_slice %8 {offsets = [0, 0], sizes = [128, 64], strides = [1, 1]} : vector<128x128xf32> to vector<128x64xf32>
    %cst_10 = arith.constant dense<0.000000e+00> : vector<96x64xf32>
    %12 = tpu.matmul %10, %11, %cst_10 {dimension_numbers = #tpu.dot_dimension_numbers<[1], [0], [0], [1], [0, 0, 1, 1], [], []>} : vector<96x128xf32>, vector<128x64xf32>, vector<96x64xf32> -> vector<96x64xf32>
    %13 = arith.addf %9, %12 : vector<96x64xf32>
    %c0_11 = arith.constant 0 : index
    %c0_12 = arith.constant 0 : index
    %14 = vector.load %arg8[%c0_11, %c0_12] : memref<96x64xf32, #tpu.memory_space<vmem>>, vector<96x64xf32>
    tpu.vector_store %arg8[%c0_11, %c0_12], %13 {strides = array<i32>} : memref<96x64xf32, #tpu.memory_space<vmem>>, vector<96x64xf32>,
    %c0_13 = arith.constant 0 : index
    %c0_14 = arith.constant 0 : index
    %15 = vector.load %arg9[%c0_13, %c0_14] : memref<96x64xf32, #tpu.memory_space<vmem>>, vector<96x64xf32>
    %c0_15 = arith.constant 0 : index
    %c0_16 = arith.constant 0 : index
    %16 = vector.load %arg3[%c0_15, %c0_16] : memref<96x128xf32, #tpu.memory_space<vmem>>, vector<96x128xf32>
    %17 = vector.extract_strided_slice %8 {offsets = [0, 64], sizes = [128, 64], strides = [1, 1]} : vector<128x128xf32> to vector<128x64xf32>
    %cst_17 = arith.constant dense<0.000000e+00> : vector<96x64xf32>
    %18 = tpu.matmul %16, %17, %cst_17 {dimension_numbers = #tpu.dot_dimension_numbers<[1], [0], [0], [1], [0, 0, 1, 1], [], []>} : vector<96x128xf32>, vector<128x64xf32>, vector<96x64xf32> -> vector<96x64xf32>
    %19 = arith.addf %15, %18 : vector<96x64xf32>
    %c0_18 = arith.constant 0 : index
    %c0_19 = arith.constant 0 : index
    %20 = vector.load %arg9[%c0_18, %c0_19] : memref<96x64xf32, #tpu.memory_space<vmem>>, vector<96x64xf32>
    tpu.vector_store %arg9[%c0_18, %c0_19], %19 {strides = array<i32>} : memref<96x64xf32, #tpu.memory_space<vmem>>, vector<96x64xf32>,
    %c1_i32 = arith.constant 1 : i32
    %21 = arith.cmpi eq, %arg0, %c1_i32 : i32
    %22 = arith.extui %21 : i1 to i32
    %c0_i32_20 = arith.constant 0 : i32
    %23 = arith.cmpi ne, %22, %c0_i32_20 : i32
    scf.if %23 {
      %c0_21 = arith.constant 0 : index
      %c0_22 = arith.constant 0 : index
      %24 = vector.load %arg8[%c0_21, %c0_22] : memref<96x64xf32, #tpu.memory_space<vmem>>, vector<96x64xf32>
      %c0_23 = arith.constant 0 : index
      %c0_24 = arith.constant 0 : index
      %25 = vector.load %arg6[%c0_23, %c0_24] : memref<96x64xf32, #tpu.memory_space<vmem>>, vector<96x64xf32>
      tpu.vector_store %arg6[%c0_23, %c0_24], %24 {strides = array<i32>} : memref<96x64xf32, #tpu.memory_space<vmem>>, vector<96x64xf32>,
      %c0_25 = arith.constant 0 : index
      %c0_26 = arith.constant 0 : index
      %26 = vector.load %arg9[%c0_25, %c0_26] : memref<96x64xf32, #tpu.memory_space<vmem>>, vector<96x64xf32>
      %c0_27 = arith.constant 0 : index
      %c0_28 = arith.constant 0 : index
      %27 = vector.load %arg7[%c0_27, %c0_28] : memref<96x64xf32, #tpu.memory_space<vmem>>, vector<96x64xf32>
      tpu.vector_store %arg7[%c0_27, %c0_28], %26 {strides = array<i32>} : memref<96x64xf32, #tpu.memory_space<vmem>>, vector<96x64xf32>,
    } else {
    }
    return
  }
  func.func @transform_0(%arg0: i32) -> (i32, i32) {
    %c0_i32 = arith.constant 0 : i32
    %c0_i32_0 = arith.constant 0 : i32
    return %arg0, %c0_i32 : i32, i32
  }
  func.func @transform_1(%arg0: i32) -> (i32, i32) {
    %c0_i32 = arith.constant 0 : i32
    %c0_i32_0 = arith.constant 0 : i32
    return %c0_i32, %arg0 : i32, i32
  }
  func.func @transform_2(%arg0: i32) -> (i32, i32) {
    %c0_i32 = arith.constant 0 : i32
    %c0_i32_0 = arith.constant 0 : i32
    return %c0_i32, %arg0 : i32, i32
  }
  func.func @transform_3(%arg0: i32) -> (i32, i32) {
    %c0_i32 = arith.constant 0 : i32
    %c0_i32_0 = arith.constant 0 : i32
    %c0_i32_1 = arith.constant 0 : i32
    return %c0_i32, %c0_i32_0 : i32, i32
  }
  func.func @transform_4(%arg0: i32) -> (i32, i32) {
    %c0_i32 = arith.constant 0 : i32
    %c0_i32_0 = arith.constant 0 : i32
    %c0_i32_1 = arith.constant 0 : i32
    return %c0_i32, %c0_i32_0 : i32, i32
  }
  func.func @transform_5(%arg0: i32) -> (i32, i32) {
    %c0_i32 = arith.constant 0 : i32
    %c0_i32_0 = arith.constant 0 : i32
    %c0_i32_1 = arith.constant 0 : i32
    return %c0_i32, %c0_i32_0 : i32, i32
  }
  func.func @transform_6(%arg0: i32) -> (i32, i32) {
    %c0_i32 = arith.constant 0 : i32
    %c0_i32_0 = arith.constant 0 : i32
    %c0_i32_1 = arith.constant 0 : i32
    return %c0_i32, %c0_i32_0 : i32, i32
  }
}

</mosaic_0001>

<bundles_post_ra>
// kernel: tpu_custom_call.1
= control target key start
LH: loop header
LB: loop body
LE: loop exit
PB: predicated region body
PF: predicated region fallthrough
CT: control target
= control target key end

     0   :  { %12 = vsyncpa [#allocation7], 0  ;;  %s1771_s21 = smov 0   ;;  %s1773_s22 = smov 0   ;;  %s2111_s0 = inlined_call_operand.vmem [shape: f32[256,64], index: 0, kind: input, shape index: {}]   ;;  %s2112_s1 = inlined_call_operand.vmem [shape: f32[96,256], index: 1, kind: input, shape index: {}]   ;;  %s2113_s2 = inlined_call_operand.vmem [shape: f32[96,256], index: 2, kind: input, shape index: {}]   ;;  %s2114_s3 = inlined_call_operand.hbm [shape: f32[64,128], index: 3, kind: input, shape index: {}]   ;;  %s2115_s4 = inlined_call_operand.vmem [shape: f32[1,128], index: 4, kind: input, shape index: {}]   ;;  %s2116_s5 = inlined_call_operand.vmem [shape: f32[96,64], index: 5, kind: output, shape index: {0}]   ;;  %s2117_s6 = inlined_call_operand.vmem [shape: f32[96,64], index: 6, kind: output, shape index: {1}]  }
   0x1   :  { %s1775_s23 = smov 0  }
   0x2 LB: > { %s1787_s24 = sadd.s32 4294967295, %s1729_s23   ;;  %s1790_s25 = sadd.s32 1, %s1729_s23   ;;  %s1729_s23 = sphi %s1775_s23, %s2131_s23   ;;  %s1725_s22 = sphi %s1773_s22, %s2130_s22   ;;  %s1721_s21 = sphi %s1771_s21, %s2129_s21  }
   0x3   : > { %s48_s26 = ssub.s32 %s1729_s23, %s1790_s25  ;;  %s51_s27 = sadd.s32 1, %s1725_s22 }
   0x4   : > { %p49_p0 = scmp.eq.s32.totalorder %s48_s26, 0  ;;  %p58_p1 = scmp.ne.s32.totalorder %s1725_s22, %s1721_s21 }
   0x5   : > { %p59_p2 = scmp.eq.s32.totalorder %s1729_s23, 0  ;;  %p1247_p3 = scmp.ge.s32.totalorder %s1729_s23, 1 }
   0x6   : > { %s1800_s28 = scalar_select %p49_p0, %s1725_s22, %s51_s27  }
   0x7   : > { %p1802_p4 = por %p59_p2, %p58_p1  ;;  %p185_p5 = scmp.lt.s32.totalorder %s1729_s23, 3 }
   0x8   : > { %p2118_p7 = scmp.eq.s32.totalorder %s1787_s24, 0  ;;  %s1731_s7 = smov [#allocation6]  }
   0x9   : > { %s2120_s29 = scalar_select %p1802_p4, 1, 0 }
   0xa   : > { %p1809_p8 = pnand %p1247_p3, %p185_p5  ;;  %s197_s8 = sshll.u32 %s1731_s7, 4  ;;  %s198_s8 = int_to_ptr.vmem [resolvable:$true] %s197_s8 }
   0xb   : > { %s1675_s12 = scalar_lea.hbm %s2114_s3, 1024 }
   0xc   : > { %s2121_s30 = scalar_select %p1809_p8, 1, 0 }
   0xd   : > { %p1600_p9 = pneg %p1809_p8  ;;  %p1676_p11 = scmp.ne.s32.totalorder %s2114_s3, %s1675_s12 }
   0xe   : > { %p1682_p1 = scmp.lt.u32.totalorder %s1675_s12, %s2114_s3 }
   0xf   : > { %p1817_p10 = pnand %p2118_p7, %p1600_p9 }
  0x11   : > { %p1677_p12 = pneg %p1817_p10 }
  0x13   : > { %p1678_p13 = pnand %p1677_p12, %p1676_p11 }
  0x15   : > { %p1679_p0 = pneg %p1678_p13 }
  0x17   : > { %p1684_p2 = pnand %p1682_p1, %p1679_p0 }
  0x19   : > { %1687 = shalt.err (!%p1684_p2)
}
  0x1a   : > { %s1688_s17 = scalar_lea.vmem %s198_s8, 1024  ;;  %p1696_p6 = scmp.lt.s32.totalorder %s198_s8, %s198_s8 }
  0x1b   : > { %p1689_p3 = scmp.ne.s32.totalorder %s198_s8, %s1688_s17  ;;  %p1697_p7 = scmp.lt.s32.totalorder %s1688_s17, %s1688_s17 }
  0x1d   : > { %p1691_p5 = pnand %p1689_p3, %p1677_p12  ;;  %p1698_p8 = por %p1697_p7, %p1696_p6 }
  0x1f   : > { %p1692_p9 = pneg %p1691_p5 }
  0x21   : > { %p1699_p4 = pnand %p1698_p8, %p1692_p9 }
  0x23   : > { %1702 = shalt.err (!%p1699_p4)
}
  0x24   : > { %s1732_s18 = smov 128   ;;  %s1733_s19 = smov 8  }
  0x25   : > { %1603 = dma.hbm_to_vmem [thread:$0]  (!%p1817_p10), %s2114_s3, 1024, %s198_s8, [#allocation7], %s1732_s18, %s1732_s18, %s1733_s19  }
  0x26   : > { %p1249_p11 = scmp.ge.s32.totalorder %s1729_s23, 2 }
  0x27   : > { %p2123_p13 = scmp.ne.s32.totalorder (!%p1249_p11), %s2120_s29, 0 }
  0x28   : > { %210 = sbr.rel (%p1249_p11) target bundleno = 69 (0x45), region = 24 }
  0x2f   : > { %222 = sbr.rel (!%p2123_p13) target bundleno = 57 (0x39), region = 32  ;;  %s224_s27 = sand.u32 (%p2123_p13), 1, %s1725_s22  }
  0x30   : > { %s1250_s7 = sshll.u32 (%p2123_p13), %s1729_s23, 3  ;;  %s1593_s10 = smul.u32 (%p2123_p13), 96, %s224_s27 }
  0x31   : > { %s228_s13 = scalar_lea.vmem (%p2123_p13), %s2112_s1, %s1250_s7 }
  0x32   : > { %v278_v0 = vld [vmem:[%s228_s13] sm:$0xff] (%p2123_p13)  ;;  %v280_v1 = vld [vmem:[%s228_s13 + $0x10] sm:$0xff] (%p2123_p13)  ;;  %s226_s8 = scalar_lea.vmem (%p2123_p13), [#allocation4], %s1593_s10 }
  0x33   : > { %v282_v2 = vld [vmem:[%s228_s13 + $0x20] sm:$0xff] (%p2123_p13)  ;;  %v284_v3 = vld [vmem:[%s228_s13 + $0x30] sm:$0xff] (%p2123_p13)  ;;  %279 = vst [vmem:[%s226_s8] sm:$0xff] (%p2123_p13), %v278_v0  ;;  %281 = vst [vmem:[%s226_s8 + $0x8] sm:$0xff] (%p2123_p13), %v280_v1 }
  0x34   : > { %v286_v4 = vld [vmem:[%s228_s13 + $0x40] sm:$0xff] (%p2123_p13)  ;;  %v288_v5 = vld [vmem:[%s228_s13 + $0x50] sm:$0xff] (%p2123_p13)  ;;  %283 = vst [vmem:[%s226_s8 + $0x10] sm:$0xff] (%p2123_p13), %v282_v2  ;;  %285 = vst [vmem:[%s226_s8 + $0x18] sm:$0xff] (%p2123_p13), %v284_v3 }
  0x35   : > { %287 = vst [vmem:[%s226_s8 + $0x20] sm:$0xff] (%p2123_p13), %v286_v4  ;;  %289 = vst [vmem:[%s226_s8 + $0x28] sm:$0xff] (%p2123_p13), %v288_v5  ;;  %v290_v6 = vld [vmem:[%s228_s13 + $0x60] sm:$0xff] (%p2123_p13)  ;;  %v292_v7 = vld [vmem:[%s228_s13 + $0x70] sm:$0xff] (%p2123_p13) }
  0x36   : > { %v294_v8 = vld [vmem:[%s228_s13 + $0x80] sm:$0xff]  ;;  %291 = vst [vmem:[%s226_s8 + $0x30] sm:$0xff] %v290_v6  ;;  %293 = vst [vmem:[%s226_s8 + $0x38] sm:$0xff] %v292_v7  ;;  %v296_v9 = vld [vmem:[%s228_s13 + $0x90] sm:$0xff] }
  0x37   : > { %295 = vst [vmem:[%s226_s8 + $0x40] sm:$0xff] %v294_v8  ;;  %v298_v10 = vld [vmem:[%s228_s13 + $0xa0] sm:$0xff]  ;;  %v300_v11 = vld [vmem:[%s228_s13 + $0xb0] sm:$0xff]  ;;  %297 = vst [vmem:[%s226_s8 + $0x48] sm:$0xff] %v296_v9 }
  0x38   : > { %299 = vst [vmem:[%s226_s8 + $0x50] sm:$0xff] %v298_v10  ;;  %301 = vst [vmem:[%s226_s8 + $0x58] sm:$0xff] %v300_v11 }
  0x39 PF: > { %p2124_p4 = scmp.ne.s32.totalorder %s2120_s29, 0 }
  0x3a   : > { %s309_s9 = sand.u32 (%p2124_p4), 1, %s1725_s22   ;;  %s1251_s14 = sshll.u32 (%p2124_p4), %s1729_s23, 3 }
  0x3b   : > { %307 = sbr.rel (!%p2124_p4) target bundleno = 69 (0x45), region = 70  ;;  %s313_s18 = scalar_lea.vmem (%p2124_p4), %s2113_s2, %s1251_s14 }
  0x3c   : > { %s1594_s15 = smul.u32 (%p2124_p4), 96, %s309_s9  ;;  %v363_v12 = vld [vmem:[%s313_s18] sm:$0xff] (%p2124_p4)  ;;  %v365_v13 = vld [vmem:[%s313_s18 + $0x10] sm:$0xff] (%p2124_p4) }
  0x3d   : > { %v367_v14 = vld [vmem:[%s313_s18 + $0x20] sm:$0xff] (%p2124_p4)  ;;  %v369_v15 = vld [vmem:[%s313_s18 + $0x30] sm:$0xff] (%p2124_p4) }
  0x3e   : > { %v371_v16 = vld [vmem:[%s313_s18 + $0x40] sm:$0xff] (%p2124_p4)  ;;  %v373_v17 = vld [vmem:[%s313_s18 + $0x50] sm:$0xff] (%p2124_p4)  ;;  %s311_s19 = scalar_lea.vmem (%p2124_p4), [#allocation5], %s1594_s15 }
  0x3f   : > { %364 = vst [vmem:[%s311_s19] sm:$0xff] (%p2124_p4), %v363_v12  ;;  %366 = vst [vmem:[%s311_s19 + $0x8] sm:$0xff] (%p2124_p4), %v365_v13  ;;  %v375_v18 = vld [vmem:[%s313_s18 + $0x60] sm:$0xff] (%p2124_p4)  ;;  %v377_v19 = vld [vmem:[%s313_s18 + $0x70] sm:$0xff] (%p2124_p4) }
  0x40   : > { %368 = vst [vmem:[%s311_s19 + $0x10] sm:$0xff] (%p2124_p4), %v367_v14  ;;  %370 = vst [vmem:[%s311_s19 + $0x18] sm:$0xff] (%p2124_p4), %v369_v15  ;;  %v379_v20 = vld [vmem:[%s313_s18 + $0x80] sm:$0xff] (%p2124_p4)  ;;  %v381_v21 = vld [vmem:[%s313_s18 + $0x90] sm:$0xff] (%p2124_p4) }
  0x41   : > { %372 = vst [vmem:[%s311_s19 + $0x20] sm:$0xff] (%p2124_p4), %v371_v16  ;;  %374 = vst [vmem:[%s311_s19 + $0x28] sm:$0xff] (%p2124_p4), %v373_v17  ;;  %v383_v22 = vld [vmem:[%s313_s18 + $0xa0] sm:$0xff] (%p2124_p4)  ;;  %v385_v23 = vld [vmem:[%s313_s18 + $0xb0] sm:$0xff] (%p2124_p4) }
  0x42   : > { %376 = vst [vmem:[%s311_s19 + $0x30] sm:$0xff] %v375_v18  ;;  %378 = vst [vmem:[%s311_s19 + $0x38] sm:$0xff] %v377_v19 }
  0x43   : > { %380 = vst [vmem:[%s311_s19 + $0x40] sm:$0xff] %v379_v20  ;;  %382 = vst [vmem:[%s311_s19 + $0x48] sm:$0xff] %v381_v21 }
  0x44   : > { %384 = vst [vmem:[%s311_s19 + $0x50] sm:$0xff] %v383_v22  ;;  %386 = vst [vmem:[%s311_s19 + $0x58] sm:$0xff] %v385_v23 }
  0x45 PF: > { %p2125_p6 = scmp.ne.s32.totalorder %s2121_s30, 0 }
  0x46   : > { %s398_s23 = sand.u32 (!%p2125_p6), 1, %s1721_s21   ;;  %p2126_p7 = scmp.eq.s32.totalorder (!%p2125_p6), %s1787_s24, 0 }
  0x47   : > { %395 = sbr.rel (%p2125_p6) target bundleno = 720 (0x2d0), region = 108 }
  0x48   : > { %s1595_s29 = smul.u32 (!%p2125_p6), 96, %s398_s23 }
  0x4a   : > { %s1855_s20 = scalar_lea.vmem (!%p2125_p6), [#allocation4], %s1595_s29  ;;  %s1857_s26 = scalar_lea.vmem (!%p2125_p6), [#allocation5], %s1595_s29 }
  0x4e   : > { %1716 = dma.done.wait (%p2126_p7), [#allocation7], 1024   ;;  %p2127_p8 = pmov %p2126_p7 }
  0x4f   : > { %s1254_s27 = sshll.u32 %s1787_s24, 4  ;;  %p2128_p12 = scmp.ne.s32.totalorder %s1787_s24, 0 }
  0x50   : > { %1718 = vsyncadd (%p2127_p8), [#allocation7], 4294966272  ;;  %p443_p10 = scmp.lt.s32.totalorder %s1254_s27, 31  ;;  %vm452_vm0 = vcmask (!%p2128_p12), 523264   ;;  %v1734_v24 = vmov (!%p2128_p12), 0.0  }
  0x51   : > { %451 = sbr.rel (%p2128_p12) target bundleno = 93 (0x5d), region = 124  ;;  %453 = vst.msk [vmem:[#allocation2] sm:$0xff] (!%p2128_p12), %vm452_vm0, %v1734_v24  ;;  %454 = vst.msk [vmem:[#allocation2 + $0x8] sm:$0xff] (!%p2128_p12), %vm452_vm0, %v1734_v24 }
  0x52   : > { %s2133_s27 = smov (!%p443_p10, %s1254_s27), 31  ;;  %455 = vst.msk [vmem:[#allocation2 + $0x10] sm:$0xff] (!%p2128_p12), %vm452_vm0, %v1734_v24  ;;  %456 = vst.msk [vmem:[#allocation2 + $0x18] sm:$0xff] (!%p2128_p12), %vm452_vm0, %v1734_v24 }
  0x53   : > { %s1255_s7 = sshll.u32 %s2133_s27, 3  ;;  %457 = vst.msk [vmem:[#allocation2 + $0x20] sm:$0xff] (!%p2128_p12), %vm452_vm0, %v1734_v24  ;;  %458 = vst.msk [vmem:[#allocation2 + $0x28] sm:$0xff] (!%p2128_p12), %vm452_vm0, %v1734_v24 }
  0x54   : > { %s1867_s11 = scalar_lea.vmem %s2111_s0, %s1255_s7  ;;  %459 = vst.msk [vmem:[#allocation2 + $0x30] sm:$0xff] (!%p2128_p12), %vm452_vm0, %v1734_v24  ;;  %460 = vst.msk [vmem:[#allocation2 + $0x38] sm:$0xff] (!%p2128_p12), %vm452_vm0, %v1734_v24 }
  0x55   : > { %461 = vst.msk [vmem:[#allocation2 + $0x40] sm:$0xff] (!%p2128_p12), %vm452_vm0, %v1734_v24  ;;  %462 = vst.msk [vmem:[#allocation2 + $0x48] sm:$0xff] (!%p2128_p12), %vm452_vm0, %v1734_v24 }
  0x56   : > { %463 = vst.msk [vmem:[#allocation2 + $0x50] sm:$0xff] (!%p2128_p12), %vm452_vm0, %v1734_v24  ;;  %464 = vst.msk [vmem:[#allocation2 + $0x58] sm:$0xff] (!%p2128_p12), %vm452_vm0, %v1734_v24 }
  0x57   : > { %465 = vst.msk [vmem:[#allocation3] sm:$0xff] (!%p2128_p12), %vm452_vm0, %v1734_v24  ;;  %466 = vst.msk [vmem:[#allocation3 + $0x8] sm:$0xff] (!%p2128_p12), %vm452_vm0, %v1734_v24 }
  0x58   : > { %467 = vst.msk [vmem:[#allocation3 + $0x10] sm:$0xff] %vm452_vm0, %v1734_v24  ;;  %468 = vst.msk [vmem:[#allocation3 + $0x18] sm:$0xff] %vm452_vm0, %v1734_v24 }
  0x59   : > { %469 = vst.msk [vmem:[#allocation3 + $0x20] sm:$0xff] %vm452_vm0, %v1734_v24  ;;  %470 = vst.msk [vmem:[#allocation3 + $0x28] sm:$0xff] %vm452_vm0, %v1734_v24 }
  0x5a   : > { %471 = vst.msk [vmem:[#allocation3 + $0x30] sm:$0xff] %vm452_vm0, %v1734_v24  ;;  %472 = vst.msk [vmem:[#allocation3 + $0x38] sm:$0xff] %vm452_vm0, %v1734_v24 }
  0x5b   : > { %473 = vst.msk [vmem:[#allocation3 + $0x40] sm:$0xff] %vm452_vm0, %v1734_v24  ;;  %474 = vst.msk [vmem:[#allocation3 + $0x48] sm:$0xff] %vm452_vm0, %v1734_v24 }
  0x5c   : > { %475 = vst.msk [vmem:[#allocation3 + $0x50] sm:$0xff] %vm452_vm0, %v1734_v24  ;;  %476 = vst.msk [vmem:[#allocation3 + $0x58] sm:$0xff] %vm452_vm0, %v1734_v24 }
  0x5d PF: > { %v493_v25 = vld [vmem:[#allocation6] sm:$0xff]  ;;  %v494_v26 = vld [vmem:[#allocation6 + $0x8] sm:$0xff]  ;;  %v495_v27 = vld [vmem:[#allocation6 + $0x10] sm:$0xff]  ;;  %vm508_vm1 = vcmask 523264   ;;  %s1735_s13 = smov 64   ;;  %p1274_p0 = scmp.ne.s32.totalorder %s1787_s24, 1 }
  0x5e   : > { %v1497_v28 = vpack.c.bf16 %v494_v26, %v493_v25  ;;  %v496_v29 = vld [vmem:[#allocation6 + $0x18] sm:$0xff]  ;;  %v497_v31 = vld [vmem:[#allocation6 + $0x20] sm:$0xff]  ;;  %v498_v32 = vld [vmem:[#allocation6 + $0x28] sm:$0xff] }
  0x5f   : > { %v1501_v30 = vpack.c.bf16 %v496_v29, %v495_v27  ;;  %v477_v33 = vld [vmem:[%s1867_s11] sm:$0xff]  ;;  %v1505_v34 = vpack.c.bf16 %v498_v32, %v497_v31  ;;  %v499_v35 = vld [vmem:[#allocation6 + $0x30] sm:$0xff]  ;;  %v500_v36 = vld [vmem:[#allocation6 + $0x38] sm:$0xff] }
  0x60   : > { %1498 = vmatprep.subr.bf16.mxu0 %v1497_v28  ;;  %1373 = vmatprep.mubr.msk.f32.mxu0 %vm508_vm1, %v477_v33  ;;  %v1509_v37 = vpack.c.bf16 %v500_v36, %v499_v35  ;;  %v478_v38 = vld [vmem:[%s1867_s11 + $0x8] sm:$0xff]  ;;  %v479_v39 = vld [vmem:[%s1867_s11 + $0x10] sm:$0xff]  ;;  %v480_v40 = vld [vmem:[%s1867_s11 + $0x18] sm:$0xff] }
  0x61   : > { %1500 = vmatpush3.bf16.msra.mxu0 %v1497_v28  ;;  %v481_v41 = vld [vmem:[%s1867_s11 + $0x20] sm:$0xff]  ;;  %v482_v42 = vld [vmem:[%s1867_s11 + $0x28] sm:$0xff]  ;;  %v483_v43 = vld [vmem:[%s1867_s11 + $0x30] sm:$0xff] }
  0x62   : > { %1502 = vmatprep.subr.bf16.mxu0 %v1501_v30  ;;  %v484_v44 = vld [vmem:[%s1867_s11 + $0x38] sm:$0xff]  ;;  %v485_v45 = vld [vmem:[%s1867_s11 + $0x40] sm:$0xff]  ;;  %v486_v46 = vld [vmem:[%s1867_s11 + $0x48] sm:$0xff] }
  0x63   : > { %v487_v47 = vld [vmem:[%s1867_s11 + $0x50] sm:$0xff]  ;;  %v488_v48 = vld [vmem:[%s1867_s11 + $0x58] sm:$0xff]  ;;  %v489_v49 = vld [vmem:[%s1867_s11 + $0x60] sm:$0xff] }
  0x64   : > { %v490_v50 = vld [vmem:[%s1867_s11 + $0x68] sm:$0xff]  ;;  %v491_v51 = vld [vmem:[%s1867_s11 + $0x70] sm:$0xff]  ;;  %v492_v52 = vld [vmem:[%s1867_s11 + $0x78] sm:$0xff] }
  0x65   : > { %1504 = vmatpush3.bf16.msra.mxu0 %v1501_v30  ;;  %v714_v53 = vld [vmem:[%s1855_s20] sm:$0xff] }
  0x66   : > { %1506 = vmatprep.subr.bf16.mxu0 %v1505_v34  ;;  %1429 = vmatprep.mubr.f32.mxu1 %v714_v53  ;;  %v1931_v54 = vld [vmem:[%s2115_s4] ss:$0 sm:$0xff] }
  0x67   : > { %v887_v31 = vld [vmem:[%s1857_s26] sm:$0xff] }
  0x69   : > { %1508 = vmatpush3.bf16.msra.mxu0 %v1505_v34 }
  0x6a   : > { %1510 = vmatprep.subr.bf16.mxu0 %v1509_v37 }
  0x6d   : > { %1512 = vmatpush3.bf16.msra.mxu0 %v1509_v37 }
  0x70   : > { %1374 = vmatmul.mubr.msk.f32.vlgmr.msra.gmra.mrb[0].mxu0 %vm508_vm1, %v478_v38 }
  0x71   : > { %1376 = vmatprep.mubr.msk.f32.mxu0 %vm508_vm1, %v479_v39 }
  0x74   : > { %1377 = vmatmul.mubr.msk.f32.gmra.mrb[2].mxu0 %vm508_vm1, %v480_v40  ;;  %v715_v40 = vld [vmem:[%s1855_s20 + $0x8] sm:$0xff] }
  0x75   : > { %1379 = vmatprep.mubr.msk.f32.mxu0 %vm508_vm1, %v481_v41  ;;  %v716_v41 = vld [vmem:[%s1855_s20 + $0x10] sm:$0xff] }
  0x78   : > { %1380 = vmatmul.mubr.msk.f32.gmra.mrb[4].mxu0 %vm508_vm1, %v482_v42  ;;  %v717_v42 = vld [vmem:[%s1855_s20 + $0x18] sm:$0xff] }
  0x79   : > { %1382 = vmatprep.mubr.msk.f32.mxu0 %vm508_vm1, %v483_v43  ;;  %v718_v43 = vld [vmem:[%s1855_s20 + $0x20] sm:$0xff] }
  0x7c   : > { %1383 = vmatmul.mubr.msk.f32.gmra.mrb[6].mxu0 %vm508_vm1, %v484_v44  ;;  %v719_v44 = vld [vmem:[%s1855_s20 + $0x28] sm:$0xff] }
  0x7d   : > { %1385 = vmatprep.mubr.msk.f32.mxu0 %vm508_vm1, %v485_v45  ;;  %v720_v45 = vld [vmem:[%s1855_s20 + $0x30] sm:$0xff] }
  0x80   : > { %1386 = vmatmul.mubr.msk.f32.gmra.mrb[8].mxu0 %vm508_vm1, %v486_v46  ;;  %v721_v46 = vld [vmem:[%s1855_s20 + $0x38] sm:$0xff] }
  0x81   : > { %1388 = vmatprep.mubr.msk.f32.mxu0 %vm508_vm1, %v487_v47  ;;  %v722_v47 = vld [vmem:[%s1855_s20 + $0x40] sm:$0xff] }
  0x84   : > { %1389 = vmatmul.mubr.msk.f32.gmra.mrb[10].mxu0 %vm508_vm1, %v488_v48  ;;  %v723_v48 = vld [vmem:[%s1855_s20 + $0x48] sm:$0xff] }
  0x85   : > { %1391 = vmatprep.mubr.msk.f32.mxu0 %vm508_vm1, %v489_v49  ;;  %v724_v49 = vld [vmem:[%s1855_s20 + $0x50] sm:$0xff] }
  0x88   : > { %1392 = vmatmul.mubr.msk.f32.gmra.mrb[12].mxu0 %vm508_vm1, %v490_v50  ;;  %v725_v50 = vld [vmem:[%s1855_s20 + $0x58] sm:$0xff] }
  0x89   : > { %1394 = vmatprep.mubr.msk.f32.mxu0 %vm508_vm1, %v491_v51  ;;  %v897_v51 = vld [vmem:[%s1857_s26 + $0x50] sm:$0xff] }
  0x8c   : > { %1395 = vmatmul.mubr.msk.f32.gmra.mrb[14].mxu0 %vm508_vm1, %v492_v52 }
  0x8d   : > { %1479 = vmatprep.mubr.f32.mxu0 %v887_v31  ;;  %v702_v31 = vld [vmem:[#allocation2] sm:$0xff] }
 0x143   : > { %v1375_v55 = vpop.f32.mrb[0].mxu0 }
 0x144   : > { %v629_v56 = vadd.f32 %v1375_v55, %v1931_v54  ;;  %v623_v57 = vpop.f32.mrb[1].mxu0 }
 0x145   : > { %v624_v58 = vadd.f32 %v1931_v54, %v623_v57 }
 0x147   : > { %v1378_v59 = vpop.f32.mrb[2].mxu0  ;;  %v1635_v60 = vpack.i.bf16 %v629_v56, %v624_v58  ;;  %v1513_v61 = vpack.c.bf16 %v629_v56, %v624_v58 }
 0x148   : > { %v639_v62 = vadd.f32 %v1378_v59, %v1931_v54  ;;  %v633_v63 = vpop.f32.mrb[3].mxu0 }
 0x149   : > { %v634_v0 = vadd.f32 %v1931_v54, %v633_v63  ;;  %1636 = vrot.lane.b32.xlu0 %v1635_v60, %s1735_s13  ;;  %1514 = vmatprep.subr.bf16.mxu1 %v1513_v61 }
 0x14a   : > { %1516 = vmatpush3.bf16.msra.mxu1 %v1513_v61 }
 0x14b   : > { %v1640_v1 = vpack.i.bf16 %v639_v62, %v634_v0  ;;  %v1517_v2 = vpack.c.bf16 %v639_v62, %v634_v0  ;;  %v1381_v3 = vpop.f32.mrb[4].mxu0 }
 0x14c   : > { %v649_v4 = vadd.f32 %v1381_v3, %v1931_v54  ;;  %v643_v5 = vpop.f32.mrb[5].mxu0 }
 0x14d   : > { %v644_v6 = vadd.f32 %v1931_v54, %v643_v5  ;;  %1641 = vrot.lane.b32.xlu0 %v1640_v1, %s1735_s13  ;;  %1518 = vmatprep.subr.bf16.mxu1 %v1517_v2 }
 0x14e   : > { %1520 = vmatpush3.bf16.msra.mxu1 %v1517_v2 }
 0x14f   : > { %v1521_v7 = vpack.c.bf16 %v649_v4, %v644_v6  ;;  %v1384_v8 = vpop.f32.mrb[6].mxu0  ;;  %v1645_v9 = vpack.i.bf16 %v649_v4, %v644_v6 }
 0x150   : > { %v659_v10 = vadd.f32 %v1384_v8, %v1931_v54  ;;  %v653_v11 = vpop.f32.mrb[7].mxu0 }
 0x151   : > { %v654_v12 = vadd.f32 %v1931_v54, %v653_v11  ;;  %1646 = vrot.lane.b32.xlu1 %v1645_v9, %s1735_s13  ;;  %1522 = vmatprep.subr.bf16.mxu1 %v1521_v7 }
 0x152   : > { %1524 = vmatpush3.bf16.msra.mxu1 %v1521_v7 }
 0x153   : > { %v1650_v13 = vpack.i.bf16 %v659_v10, %v654_v12  ;;  %v1525_v14 = vpack.c.bf16 %v659_v10, %v654_v12  ;;  %v1387_v15 = vpop.f32.mrb[8].mxu0 }
 0x154   : > { %v669_v16 = vadd.f32 %v1387_v15, %v1931_v54  ;;  %v663_v17 = vpop.f32.mrb[9].mxu0 }
 0x155   : > { %v664_v18 = vadd.f32 %v1931_v54, %v663_v17  ;;  %1651 = vrot.lane.b32.xlu1 %v1650_v13, %s1735_s13  ;;  %1526 = vmatprep.subr.bf16.mxu1 %v1525_v14 }
 0x156   : > { %1528 = vmatpush3.bf16.msra.mxu1 %v1525_v14 }
 0x157   : > { %v1655_v19 = vpack.i.bf16 %v669_v16, %v664_v18  ;;  %v1529_v20 = vpack.c.bf16 %v669_v16, %v664_v18  ;;  %v1390_v21 = vpop.f32.mrb[10].mxu0 }
 0x158   : > { %v679_v22 = vadd.f32 %v1390_v21, %v1931_v54  ;;  %v673_v23 = vpop.f32.mrb[11].mxu0  ;;  %v898_v21 = vld [vmem:[%s1857_s26 + $0x58] sm:$0xff] }
 0x159   : > { %v674_v24 = vadd.f32 %v1931_v54, %v673_v23  ;;  %1656 = vrot.lane.b32.xlu0 %v1655_v19, %s1735_s13  ;;  %1530 = vmatprep.subr.bf16.mxu1 %v1529_v20  ;;  %v890_v23 = vld [vmem:[%s1857_s26 + $0x18] sm:$0xff] }
 0x15a   : > { %1532 = vmatpush3.bf16.msra.mxu1 %v1529_v20  ;;  %v888_v20 = vld [vmem:[%s1857_s26 + $0x8] sm:$0xff] }
 0x15b   : > { %v1660_v25 = vpack.i.bf16 %v679_v22, %v674_v24  ;;  %v1533_v26 = vpack.c.bf16 %v679_v22, %v674_v24  ;;  %v1393_v27 = vpop.f32.mrb[12].mxu0  ;;  %v889_v22 = vld [vmem:[%s1857_s26 + $0x10] sm:$0xff]  ;;  %v891_v24 = vld [vmem:[%s1857_s26 + $0x20] sm:$0xff] }
 0x15c   : > { %v689_v28 = vadd.f32 %v1393_v27, %v1931_v54  ;;  %v683_v29 = vpop.f32.mrb[13].mxu0  ;;  %v894_v27 = vld [vmem:[%s1857_s26 + $0x38] sm:$0xff] }
 0x15d   : > { %v684_v30 = vadd.f32 %v1931_v54, %v683_v29  ;;  %1661 = vrot.lane.b32.xlu1 %v1660_v25, %s1735_s13  ;;  %1534 = vmatprep.subr.bf16.mxu1 %v1533_v26  ;;  %v892_v25 = vld [vmem:[%s1857_s26 + $0x28] sm:$0xff] }
 0x15e   : > { %1536 = vmatpush3.bf16.msra.mxu1 %v1533_v26  ;;  %v893_v26 = vld [vmem:[%s1857_s26 + $0x30] sm:$0xff]  ;;  %v896_v29 = vld [vmem:[%s1857_s26 + $0x48] sm:$0xff] }
 0x15f   : > { %v1665_v32 = vpack.i.bf16 %v689_v28, %v684_v30  ;;  %v1537_v33 = vpack.c.bf16 %v689_v28, %v684_v30  ;;  %v1396_v34 = vpop.f32.mrb[14].mxu0  ;;  %v895_v28 = vld [vmem:[%s1857_s26 + $0x40] sm:$0xff]  ;;  %v703_v30 = vld [vmem:[#allocation2 + $0x8] sm:$0xff] }
 0x160   : > { %v699_v35 = vadd.f32 %v1396_v34, %v1931_v54  ;;  %v693_v36 = vpop.f32.mrb[15].mxu0 }
 0x161   : > { %v694_v37 = vadd.f32 %v1931_v54, %v693_v36  ;;  %1666 = vrot.lane.b32.xlu0 %v1665_v32, %s1735_s13  ;;  %1538 = vmatprep.subr.bf16.mxu1 %v1537_v33  ;;  %v705_v36 = vld [vmem:[#allocation2 + $0x18] sm:$0xff] }
 0x162   : > { %1540 = vmatpush3.bf16.msra.mxu1 %v1537_v33 }
 0x163   : > { %v1670_v38 = vpack.i.bf16 %v699_v35, %v694_v37  ;;  %v1541_v39 = vpack.c.bf16 %v699_v35, %v694_v37  ;;  %v704_v37 = vld [vmem:[#allocation2 + $0x10] sm:$0xff] }
 0x165   : > { %1671 = vrot.lane.b32.xlu1 %v1670_v38, %s1735_s13  ;;  %1542 = vmatprep.subr.bf16.mxu1 %v1541_v39 }
 0x166   : > { %1544 = vmatpush3.bf16.msra.mxu1 %v1541_v39 }
 0x169   : > { %1430 = vmatmul.mubr.f32.vlgmr.msra.gmra.mrb[0].mxu1 %v715_v40 }
 0x16a   : > { %1432 = vmatprep.mubr.f32.mxu1 %v716_v41 }
 0x16d   : > { %1433 = vmatmul.mubr.f32.gmra.mrb[2].mxu1 %v717_v42  ;;  %v707_v42 = vld [vmem:[#allocation2 + $0x28] sm:$0xff] }
 0x16e   : > { %1435 = vmatprep.mubr.f32.mxu1 %v718_v43  ;;  %v706_v43 = vld [vmem:[#allocation2 + $0x20] sm:$0xff] }
 0x171   : > { %1436 = vmatmul.mubr.f32.gmra.mrb[4].mxu1 %v719_v44 }
 0x172   : > { %1438 = vmatprep.mubr.f32.mxu1 %v720_v45 }
 0x175   : > { %1439 = vmatmul.mubr.f32.gmra.mrb[6].mxu1 %v721_v46 }
 0x176   : > { %1441 = vmatprep.mubr.f32.mxu1 %v722_v47 }
 0x179   : > { %1442 = vmatmul.mubr.f32.gmra.mrb[8].mxu1 %v723_v48  ;;  %v709_v48 = vld [vmem:[#allocation2 + $0x38] sm:$0xff] }
 0x17a   : > { %1444 = vmatprep.mubr.f32.mxu1 %v724_v49  ;;  %v708_v49 = vld [vmem:[#allocation2 + $0x30] sm:$0xff] }
 0x17d   : > { %1445 = vmatmul.mubr.f32.gmra.mrb[10].mxu1 %v725_v50 }
 0x17e   : > { %1494 = vmatprep.mubr.f32.mxu1 %v897_v51 }
 0x1bb   : > { %v1637_v52 = vpop.permute.xlu0 %1636 }
 0x1bc   : > { %v1639_v53 = vunpack.i.h.bf16 %v1637_v52  ;;  %v1638_v54 = vunpack.i.l.bf16 %v1637_v52 }
 0x1be   : > { %v1545_v55 = vpack.c.bf16 %v1639_v53, %v1638_v54  ;;  %v711_v54 = vld [vmem:[#allocation2 + $0x48] sm:$0xff] }
 0x1bf   : > { %v1642_v56 = vpop.permute.xlu0 %1641 }
 0x1c0   : > { %v1644_v57 = vunpack.i.h.bf16 %v1642_v56  ;;  %v1643_v58 = vunpack.i.l.bf16 %v1642_v56  ;;  %1546 = vmatprep.subr.bf16.mxu0 %v1545_v55  ;;  %1577 = vmatprep.subr.bf16.mxu1 %v1545_v55 }
 0x1c1   : > { %1548 = vmatpush3.bf16.msra.mxu0 %v1545_v55  ;;  %1585 = vmatpush3.bf16.msra.mxu1 %v1545_v55  ;;  %v710_v55 = vld [vmem:[#allocation2 + $0x40] sm:$0xff] }
 0x1c2   : > { %v1549_v59 = vpack.c.bf16 %v1644_v57, %v1643_v58 }
 0x1c3   : > { %v1647_v60 = vpop.permute.xlu1 %1646 }
 0x1c4   : > { %v1649_v61 = vunpack.i.h.bf16 %v1647_v60  ;;  %v1648_v62 = vunpack.i.l.bf16 %v1647_v60  ;;  %1550 = vmatprep.subr.bf16.mxu0 %v1549_v59  ;;  %1578 = vmatprep.subr.bf16.mxu1 %v1549_v59  ;;  %v713_v60 = vld [vmem:[#allocation2 + $0x58] sm:$0xff] }
 0x1c5   : > { %1552 = vmatpush3.bf16.msra.mxu0 %v1549_v59  ;;  %1586 = vmatpush3.bf16.msra.mxu1 %v1549_v59 }
 0x1c6   : > { %v1553_v63 = vpack.c.bf16 %v1649_v61, %v1648_v62  ;;  %v712_v61 = vld [vmem:[#allocation2 + $0x50] sm:$0xff] }
 0x1c7   : > { %v1652_v0 = vpop.permute.xlu1 %1651 }
 0x1c8   : > { %v1654_v1 = vunpack.i.h.bf16 %v1652_v0  ;;  %v1653_v2 = vunpack.i.l.bf16 %v1652_v0  ;;  %1554 = vmatprep.subr.bf16.mxu0 %v1553_v63  ;;  %1579 = vmatprep.subr.bf16.mxu1 %v1553_v63 }
 0x1c9   : > { %1556 = vmatpush3.bf16.msra.mxu0 %v1553_v63  ;;  %1587 = vmatpush3.bf16.msra.mxu1 %v1553_v63 }
 0x1ca   : > { %v1557_v3 = vpack.c.bf16 %v1654_v1, %v1653_v2  ;;  %v876_v2 = vld [vmem:[#allocation3 + $0x8] sm:$0xff] }
 0x1cb   : > { %v1657_v4 = vpop.permute.xlu0 %1656 }
 0x1cc   : > { %v1659_v5 = vunpack.i.h.bf16 %v1657_v4  ;;  %v1658_v6 = vunpack.i.l.bf16 %v1657_v4  ;;  %1558 = vmatprep.subr.bf16.mxu0 %v1557_v3  ;;  %1580 = vmatprep.subr.bf16.mxu1 %v1557_v3  ;;  %v875_v4 = vld [vmem:[#allocation3] sm:$0xff] }
 0x1cd   : > { %1560 = vmatpush3.bf16.msra.mxu0 %v1557_v3  ;;  %1588 = vmatpush3.bf16.msra.mxu1 %v1557_v3  ;;  %v886_v3 = vld [vmem:[#allocation3 + $0x58] sm:$0xff] }
 0x1ce   : > { %v1561_v7 = vpack.c.bf16 %v1659_v5, %v1658_v6  ;;  %v885_v5 = vld [vmem:[#allocation3 + $0x50] sm:$0xff] }
 0x1cf   : > { %v1662_v8 = vpop.permute.xlu1 %1661 }
 0x1d0   : > { %v1664_v9 = vunpack.i.h.bf16 %v1662_v8  ;;  %v1663_v10 = vunpack.i.l.bf16 %v1662_v8  ;;  %1562 = vmatprep.subr.bf16.mxu0 %v1561_v7  ;;  %1581 = vmatprep.subr.bf16.mxu1 %v1561_v7 }
 0x1d1   : > { %1564 = vmatpush3.bf16.msra.mxu0 %v1561_v7  ;;  %1589 = vmatpush3.bf16.msra.mxu1 %v1561_v7 }
 0x1d2   : > { %v1565_v11 = vpack.c.bf16 %v1664_v9, %v1663_v10 }
 0x1d3   : > { %v1667_v12 = vpop.permute.xlu0 %1666 }
 0x1d4   : > { %v1669_v13 = vunpack.i.h.bf16 %v1667_v12  ;;  %v1668_v14 = vunpack.i.l.bf16 %v1667_v12  ;;  %1566 = vmatprep.subr.bf16.mxu0 %v1565_v11  ;;  %1582 = vmatprep.subr.bf16.mxu1 %v1565_v11 }
 0x1d5   : > { %1568 = vmatpush3.bf16.msra.mxu0 %v1565_v11  ;;  %1590 = vmatpush3.bf16.msra.mxu1 %v1565_v11 }
 0x1d6   : > { %v1569_v15 = vpack.c.bf16 %v1669_v13, %v1668_v14  ;;  %v878_v13 = vld [vmem:[#allocation3 + $0x18] sm:$0xff] }
 0x1d7   : > { %v1672_v16 = vpop.permute.xlu1 %1671 }
 0x1d8   : > { %v1674_v17 = vunpack.i.h.bf16 %v1672_v16  ;;  %v1673_v18 = vunpack.i.l.bf16 %v1672_v16  ;;  %1570 = vmatprep.subr.bf16.mxu0 %v1569_v15  ;;  %1583 = vmatprep.subr.bf16.mxu1 %v1569_v15 }
 0x1d9   : > { %1572 = vmatpush3.bf16.msra.mxu0 %v1569_v15  ;;  %1591 = vmatpush3.bf16.msra.mxu1 %v1569_v15  ;;  %v877_v15 = vld [vmem:[#allocation3 + $0x10] sm:$0xff] }
 0x1da   : > { %v1573_v19 = vpack.c.bf16 %v1674_v17, %v1673_v18 }
 0x1dc   : > { %1574 = vmatprep.subr.bf16.mxu0 %v1573_v19  ;;  %1584 = vmatprep.subr.bf16.mxu1 %v1573_v19 }
 0x1dd   : > { %1576 = vmatpush3.bf16.msra.mxu0 %v1573_v19  ;;  %1592 = vmatpush3.bf16.msra.mxu1 %v1573_v19 }
 0x1e0   : > { %1480 = vmatmul.mubr.f32.vlgmr.msra.gmra.mrb[16].mxu0 %v888_v20  ;;  %1495 = vmatmul.mubr.f32.vlgmr.msra.gmra.mrb[12].mxu1 %v898_v21  ;;  %v880_v20 = vld [vmem:[#allocation3 + $0x28] sm:$0xff]  ;;  %v879_v21 = vld [vmem:[#allocation3 + $0x20] sm:$0xff] }
 0x1e1   : > { %1482 = vmatprep.mubr.f32.mxu0 %v889_v22 }
 0x1e4   : > { %1483 = vmatmul.mubr.f32.gmra.mrb[18].mxu0 %v890_v23 }
 0x1e5   : > { %1485 = vmatprep.mubr.f32.mxu0 %v891_v24 }
 0x1e8   : > { %1486 = vmatmul.mubr.f32.gmra.mrb[20].mxu0 %v892_v25 }
 0x1e9   : > { %1488 = vmatprep.mubr.f32.mxu0 %v893_v26  ;;  %v882_v26 = vld [vmem:[#allocation3 + $0x38] sm:$0xff] }
 0x1ec   : > { %1489 = vmatmul.mubr.f32.gmra.mrb[22].mxu0 %v894_v27  ;;  %v881_v27 = vld [vmem:[#allocation3 + $0x30] sm:$0xff] }
 0x1ed   : > { %1491 = vmatprep.mubr.f32.mxu0 %v895_v28 }
 0x1f0   : > { %1492 = vmatmul.mubr.f32.gmra.mrb[24].mxu0 %v896_v29 }
 0x23c   : > { %v1431_v32 = vpop.f32.mrb[0].mxu1 }
 0x23d   : > { %v852_v33 = vadd.f32 %v1431_v32, %v703_v30  ;;  %v792_v34 = vpop.f32.mrb[1].mxu1  ;;  %v884_v32 = vld [vmem:[#allocation3 + $0x48] sm:$0xff] }
 0x23e   : > { %v851_v35 = vadd.f32 %v792_v34, %v702_v31 }
 0x23f   : > { %864 = vst.msk [vmem:[#allocation2 + $0x8] sm:$0xff] %vm508_vm1, %v852_v33  ;;  %v883_v33 = vld [vmem:[#allocation3 + $0x40] sm:$0xff] }
 0x240   : > { %863 = vst.msk [vmem:[#allocation2] sm:$0xff] %vm508_vm1, %v851_v35  ;;  %v1434_v38 = vpop.f32.mrb[2].mxu1 }
 0x241   : > { %v854_v39 = vadd.f32 %v1434_v38, %v705_v36  ;;  %v802_v40 = vpop.f32.mrb[3].mxu1 }
 0x242   : > { %v853_v41 = vadd.f32 %v802_v40, %v704_v37 }
 0x243   : > { %866 = vst.msk [vmem:[#allocation2 + $0x18] sm:$0xff] %vm508_vm1, %v854_v39 }
 0x244   : > { %865 = vst.msk [vmem:[#allocation2 + $0x10] sm:$0xff] %vm508_vm1, %v853_v41  ;;  %v1437_v44 = vpop.f32.mrb[4].mxu1 }
 0x245   : > { %v856_v45 = vadd.f32 %v1437_v44, %v707_v42  ;;  %v812_v46 = vpop.f32.mrb[5].mxu1 }
 0x246   : > { %v855_v47 = vadd.f32 %v812_v46, %v706_v43  ;;  %v1117_v39 = vld [vmem:[#allocation2 + $0x8] sm:$0xff] (!%p1274_p0) }
 0x247   : > { %868 = vst.msk [vmem:[#allocation2 + $0x28] sm:$0xff] %vm508_vm1, %v856_v45  ;;  %v1116_v38 = vld [vmem:[#allocation2] sm:$0xff] (!%p1274_p0)  ;;  %1129 = vst.msk [vmem:[%s2116_s5 + $0x8] sm:$0xff] (!%p1274_p0), %vm508_vm1, %v1117_v39 }
 0x248   : > { %867 = vst.msk [vmem:[#allocation2 + $0x20] sm:$0xff] %vm508_vm1, %v855_v47  ;;  %v1440_v50 = vpop.f32.mrb[6].mxu1  ;;  %1128 = vst.msk [vmem:[%s2116_s5] sm:$0xff] (!%p1274_p0), %vm508_vm1, %v1116_v38 }
 0x249   : > { %v858_v51 = vadd.f32 %v1440_v50, %v709_v48  ;;  %v822_v52 = vpop.f32.mrb[7].mxu1 }
 0x24a   : > { %v857_v53 = vadd.f32 %v822_v52, %v708_v49  ;;  %v1119_v41 = vld [vmem:[#allocation2 + $0x18] sm:$0xff] (!%p1274_p0) }
 0x24b   : > { %870 = vst.msk [vmem:[#allocation2 + $0x38] sm:$0xff] %vm508_vm1, %v858_v51  ;;  %v1118_v40 = vld [vmem:[#allocation2 + $0x10] sm:$0xff] (!%p1274_p0)  ;;  %1131 = vst.msk [vmem:[%s2116_s5 + $0x18] sm:$0xff] (!%p1274_p0), %vm508_vm1, %v1119_v41 }
 0x24c   : > { %869 = vst.msk [vmem:[#allocation2 + $0x30] sm:$0xff] %vm508_vm1, %v857_v53  ;;  %v1443_v56 = vpop.f32.mrb[8].mxu1  ;;  %1130 = vst.msk [vmem:[%s2116_s5 + $0x10] sm:$0xff] (!%p1274_p0), %vm508_vm1, %v1118_v40 }
 0x24d   : > { %v860_v57 = vadd.f32 %v1443_v56, %v711_v54  ;;  %v832_v58 = vpop.f32.mrb[9].mxu1 }
 0x24e   : > { %v859_v59 = vadd.f32 %v832_v58, %v710_v55  ;;  %v1121_v43 = vld [vmem:[#allocation2 + $0x28] sm:$0xff] (!%p1274_p0) }
 0x24f   : > { %872 = vst.msk [vmem:[#allocation2 + $0x48] sm:$0xff] %vm508_vm1, %v860_v57  ;;  %v1120_v42 = vld [vmem:[#allocation2 + $0x20] sm:$0xff] (!%p1274_p0)  ;;  %1133 = vst.msk [vmem:[%s2116_s5 + $0x28] sm:$0xff] (!%p1274_p0), %vm508_vm1, %v1121_v43 }
 0x250   : > { %871 = vst.msk [vmem:[#allocation2 + $0x40] sm:$0xff] %vm508_vm1, %v859_v59  ;;  %v1446_v62 = vpop.f32.mrb[10].mxu1  ;;  %1132 = vst.msk [vmem:[%s2116_s5 + $0x20] sm:$0xff] (!%p1274_p0), %vm508_vm1, %v1120_v42 }
 0x251   : > { %v862_v63 = vadd.f32 %v1446_v62, %v713_v60  ;;  %v842_v0 = vpop.f32.mrb[11].mxu1 }
 0x252   : > { %v861_v1 = vadd.f32 %v842_v0, %v712_v61  ;;  %v1123_v45 = vld [vmem:[#allocation2 + $0x38] sm:$0xff] (!%p1274_p0) }
 0x253   : > { %874 = vst.msk [vmem:[#allocation2 + $0x58] sm:$0xff] %vm508_vm1, %v862_v63  ;;  %v1122_v44 = vld [vmem:[#allocation2 + $0x30] sm:$0xff] (!%p1274_p0)  ;;  %1135 = vst.msk [vmem:[%s2116_s5 + $0x38] sm:$0xff] (!%p1274_p0), %vm508_vm1, %v1123_v45 }
 0x254   : > { %873 = vst.msk [vmem:[#allocation2 + $0x50] sm:$0xff] %vm508_vm1, %v861_v1  ;;  %1134 = vst.msk [vmem:[%s2116_s5 + $0x30] sm:$0xff] (!%p1274_p0), %vm508_vm1, %v1122_v44 }
 0x256   : > { %v1125_v47 = vld [vmem:[#allocation2 + $0x48] sm:$0xff] (!%p1274_p0) }
 0x257   : > { %v1124_v46 = vld [vmem:[#allocation2 + $0x40] sm:$0xff] (!%p1274_p0)  ;;  %1137 = vst.msk [vmem:[%s2116_s5 + $0x48] sm:$0xff] (!%p1274_p0), %vm508_vm1, %v1125_v47 }
 0x258   : > { %1136 = vst.msk [vmem:[%s2116_s5 + $0x40] sm:$0xff] (!%p1274_p0), %vm508_vm1, %v1124_v46 }
 0x25a   : > { %v1127_v49 = vld [vmem:[#allocation2 + $0x58] sm:$0xff] (!%p1274_p0) }
 0x25b   : > { %v1126_v48 = vld [vmem:[#allocation2 + $0x50] sm:$0xff] (!%p1274_p0)  ;;  %1139 = vst.msk [vmem:[%s2116_s5 + $0x58] sm:$0xff] (!%p1274_p0), %vm508_vm1, %v1127_v49 }
 0x25c   : > { %1138 = vst.msk [vmem:[%s2116_s5 + $0x50] sm:$0xff] (!%p1274_p0), %vm508_vm1, %v1126_v48 }
 0x2b3   : > { %v1481_v6 = vpop.f32.mrb[16].mxu0  ;;  %v1496_v7 = vpop.f32.mrb[12].mxu1 }
 0x2b4   : > { %v1089_v8 = vadd.f32 %v1481_v6, %v876_v2  ;;  %v1029_v9 = vpop.f32.mrb[17].mxu0  ;;  %v1099_v10 = vadd.f32 %v1496_v7, %v886_v3  ;;  %v1079_v11 = vpop.f32.mrb[13].mxu1 }
 0x2b5   : > { %v1088_v12 = vadd.f32 %v1029_v9, %v875_v4  ;;  %v1098_v14 = vadd.f32 %v1079_v11, %v885_v5 }
 0x2b6   : > { %1101 = vst.msk [vmem:[#allocation3 + $0x8] sm:$0xff] %vm508_vm1, %v1089_v8  ;;  %1111 = vst.msk [vmem:[#allocation3 + $0x58] sm:$0xff] %vm508_vm1, %v1099_v10 }
 0x2b7   : > { %1100 = vst.msk [vmem:[#allocation3] sm:$0xff] %vm508_vm1, %v1088_v12  ;;  %v1484_v16 = vpop.f32.mrb[18].mxu0  ;;  %1110 = vst.msk [vmem:[#allocation3 + $0x50] sm:$0xff] %vm508_vm1, %v1098_v14 }
 0x2b8   : > { %v1091_v17 = vadd.f32 %v1484_v16, %v878_v13  ;;  %v1039_v18 = vpop.f32.mrb[19].mxu0 }
 0x2b9   : > { %v1090_v19 = vadd.f32 %v1039_v18, %v877_v15 }
 0x2ba   : > { %1103 = vst.msk [vmem:[#allocation3 + $0x18] sm:$0xff] %vm508_vm1, %v1091_v17 }
 0x2bb   : > { %1102 = vst.msk [vmem:[#allocation3 + $0x10] sm:$0xff] %vm508_vm1, %v1090_v19  ;;  %v1487_v22 = vpop.f32.mrb[20].mxu0 }
 0x2bc   : > { %v1093_v23 = vadd.f32 %v1487_v22, %v880_v20  ;;  %v1049_v24 = vpop.f32.mrb[21].mxu0 }
 0x2bd   : > { %v1092_v25 = vadd.f32 %v1049_v24, %v879_v21  ;;  %v1141_v51 = vld [vmem:[#allocation3 + $0x8] sm:$0xff] (!%p1274_p0)  ;;  %v1151_v61 = vld [vmem:[#allocation3 + $0x58] sm:$0xff] (!%p1274_p0) }
 0x2be   : > { %1105 = vst.msk [vmem:[#allocation3 + $0x28] sm:$0xff] %vm508_vm1, %v1093_v23  ;;  %v1140_v50 = vld [vmem:[#allocation3] sm:$0xff] (!%p1274_p0)  ;;  %1153 = vst.msk [vmem:[%s2117_s6 + $0x8] sm:$0xff] (!%p1274_p0), %vm508_vm1, %v1141_v51  ;;  %v1150_v60 = vld [vmem:[#allocation3 + $0x50] sm:$0xff] (!%p1274_p0) }
 0x2bf   : > { %1104 = vst.msk [vmem:[#allocation3 + $0x20] sm:$0xff] %vm508_vm1, %v1092_v25  ;;  %v1490_v28 = vpop.f32.mrb[22].mxu0  ;;  %1152 = vst.msk [vmem:[%s2117_s6] sm:$0xff] (!%p1274_p0), %vm508_vm1, %v1140_v50 }
 0x2c0   : > { %v1095_v29 = vadd.f32 %v1490_v28, %v882_v26  ;;  %v1059_v30 = vpop.f32.mrb[23].mxu0  ;;  %1162 = vst.msk [vmem:[%s2117_s6 + $0x50] sm:$0xff] (!%p1274_p0), %vm508_vm1, %v1150_v60  ;;  %1163 = vst.msk [vmem:[%s2117_s6 + $0x58] sm:$0xff] (!%p1274_p0), %vm508_vm1, %v1151_v61 }
 0x2c1   : > { %v1094_v31 = vadd.f32 %v1059_v30, %v881_v27  ;;  %1115 = sbr.rel (%p1274_p0) target bundleno = 720 (0x2d0), region = 128  ;;  %v1143_v53 = vld [vmem:[#allocation3 + $0x18] sm:$0xff] (!%p1274_p0) }
 0x2c2   : > { %1107 = vst.msk [vmem:[#allocation3 + $0x38] sm:$0xff] %vm508_vm1, %v1095_v29  ;;  %v1142_v52 = vld [vmem:[#allocation3 + $0x10] sm:$0xff] (!%p1274_p0)  ;;  %1155 = vst.msk [vmem:[%s2117_s6 + $0x18] sm:$0xff] (!%p1274_p0), %vm508_vm1, %v1143_v53 }
 0x2c3   : > { %1106 = vst.msk [vmem:[#allocation3 + $0x30] sm:$0xff] %vm508_vm1, %v1094_v31  ;;  %v1493_v34 = vpop.f32.mrb[24].mxu0  ;;  %1154 = vst.msk [vmem:[%s2117_s6 + $0x10] sm:$0xff] (!%p1274_p0), %vm508_vm1, %v1142_v52 }
 0x2c4   : > { %v1097_v35 = vadd.f32 %v1493_v34, %v884_v32  ;;  %v1069_v36 = vpop.f32.mrb[25].mxu0 }
 0x2c5   : > { %v1096_v37 = vadd.f32 %v1069_v36, %v883_v33  ;;  %v1145_v55 = vld [vmem:[#allocation3 + $0x28] sm:$0xff] (!%p1274_p0) }
 0x2c6   : > { %1109 = vst.msk [vmem:[#allocation3 + $0x48] sm:$0xff] %vm508_vm1, %v1097_v35  ;;  %v1144_v54 = vld [vmem:[#allocation3 + $0x20] sm:$0xff] (!%p1274_p0)  ;;  %1157 = vst.msk [vmem:[%s2117_s6 + $0x28] sm:$0xff] (!%p1274_p0), %vm508_vm1, %v1145_v55 }
 0x2c7   : > { %1108 = vst.msk [vmem:[#allocation3 + $0x40] sm:$0xff] %vm508_vm1, %v1096_v37  ;;  %1156 = vst.msk [vmem:[%s2117_s6 + $0x20] sm:$0xff] (!%p1274_p0), %vm508_vm1, %v1144_v54 }
 0x2c9   : > { %v1147_v57 = vld [vmem:[#allocation3 + $0x38] sm:$0xff] }
 0x2ca   : > { %v1146_v56 = vld [vmem:[#allocation3 + $0x30] sm:$0xff]  ;;  %1159 = vst.msk [vmem:[%s2117_s6 + $0x38] sm:$0xff] %vm508_vm1, %v1147_v57 }
 0x2cb   : > { %1158 = vst.msk [vmem:[%s2117_s6 + $0x30] sm:$0xff] %vm508_vm1, %v1146_v56 }
 0x2cd   : > { %v1149_v59 = vld [vmem:[#allocation3 + $0x48] sm:$0xff] }
 0x2ce   : > { %v1148_v58 = vld [vmem:[#allocation3 + $0x40] sm:$0xff]  ;;  %1161 = vst.msk [vmem:[%s2117_s6 + $0x48] sm:$0xff] %vm508_vm1, %v1149_v59 }
 0x2cf   : > { %1160 = vst.msk [vmem:[%s2117_s6 + $0x40] sm:$0xff] %vm508_vm1, %v1148_v58 }
 0x2d0 PF: > { %p15_p1 = scmp.ge.s32.totalorder %s1790_s25, 4   ;;  %s2129_s21 = smov %s1725_s22 }
 0x2d1   : > { %s2130_s22 = smov %s1800_s28  ;;  %s2131_s23 = smov %s1790_s25 }
 0x2d2   :  { %17 = sbr.rel (!%p15_p1) target bundleno = 2 (0x2), region = 179 }
 0x2d9   :  { %1181 = vsyncpa [#allocation7], 1 }
 0x2da   :  { %1183 = vsyncpa [#allocation7 + $0x1], 1 }

</bundles_post_ra>
